<compile_context>
chip_gen: v6e
topology: v6e:2x2x1
jax: 0.10.0
libtpu: 0.0.40
codegen_flags: <defaults>
</compile_context>

<pallas_src>
import jax
import jax.numpy as jnp
from jax.experimental import pallas as pl
from jax.experimental.pallas import tpu as pltpu


def _round_up(x, m):
    return (x + m - 1) // m * m


def gnn_kernel(adj_ref, x_ref,
               w1_ref, b1_ref,
               w2_ref, b2_ref,
               w3_ref, b3_ref,
               wo1_ref, wo2_ref, wo3_ref, bo_ref,
               out_ref):
    """Fused GNN forward: three GIN layers + split output projection.

    adj_ref already contains the (1+eps)*I self-loop folded in, so each GIN
    aggregation is one MXU matmul.  Matmul operands are bf16; accumulation,
    bias add and ReLU are f32 (VPU stays on the f32 path -> v5e-safe).
    All operands live fully in VMEM (small, padded graph; single grid point).
    """
    cdt = adj_ref.dtype                 # bf16 compute dtype for MXU operands
    adj = adj_ref[...]                  # [Np, Np] bf16, includes self term

    def gin(h_cdt, w_ref, b_ref):
        # Aggregation: A' @ h   (self term already folded into A')
        agg = jnp.dot(adj, h_cdt, preferred_element_type=jnp.float32)
        # Linear + ReLU (bias add / max in f32).
        z = jnp.dot(agg.astype(cdt), w_ref[...],
                    preferred_element_type=jnp.float32) + b_ref[...]
        return jnp.maximum(z, 0.0)

    x1 = gin(x_ref[...], w1_ref, b1_ref)        # [Np, Hp] f32
    x1c = x1.astype(cdt)
    x2 = gin(x1c, w2_ref, b2_ref)
    x2c = x2.astype(cdt)
    x3 = gin(x2c, w3_ref, b3_ref)
    x3c = x3.astype(cdt)

    # concat([x1, x2, x3], 1) @ Wo  ==  x1 @ Wo1 + x2 @ Wo2 + x3 @ Wo3
    # (three accumulating MXU matmuls, no lane-relayout concat copy).
    out = (jnp.dot(x1c, wo1_ref[...], preferred_element_type=jnp.float32)
           + jnp.dot(x2c, wo2_ref[...], preferred_element_type=jnp.float32)
           + jnp.dot(x3c, wo3_ref[...], preferred_element_type=jnp.float32)
           + bo_ref[...])
    # F.dropout in eval mode is the identity.
    out_ref[...] = out.astype(out_ref.dtype)


def gnn_forward(adj, x, params, *, eps=0.0, compute_dtype=jnp.bfloat16):
    """Wrapper: host-side prep (fold self-loop, pad to lane-dense tiles,
    split output weight), then one fused pallas_call.  Glue only."""
    N, input_dim = x.shape
    hidden_dim = params["w1"].shape[1]
    output_dim = params["wo"].shape[1]

    # Fold the GIN self term (1+eps)*h into the adjacency: A' = A + (1+eps)I.
    adj_aug = adj + (1.0 + eps) * jnp.eye(N, dtype=adj.dtype)

    # Pad nodes and every feature dim to multiples of 128 so the lane axis is
    # dense everywhere (dense MXU tiles, unmasked output stores).  Zero
    # padding is mathematically exact here (padded rows/cols never feed back
    # into real rows) and is stripped after the call.
    Np = _round_up(N, 128)
    Ip = _round_up(input_dim, 128)
    Hp = _round_up(hidden_dim, 128)
    Op = _round_up(output_dim, 128)

    def pad2(a, rows, cols):
        return jnp.pad(a, ((0, rows - a.shape[0]), (0, cols - a.shape[1])))

    adj_p = pad2(adj_aug, Np, Np).astype(compute_dtype)
    x_p = pad2(x, Np, Ip).astype(compute_dtype)

    w1 = pad2(params["w1"], Ip, Hp).astype(compute_dtype)
    w2 = pad2(params["w2"], Hp, Hp).astype(compute_dtype)
    w3 = pad2(params["w3"], Hp, Hp).astype(compute_dtype)
    b1 = pad2(params["b1"], 1, Hp).astype(jnp.float32)
    b2 = pad2(params["b2"], 1, Hp).astype(jnp.float32)
    b3 = pad2(params["b3"], 1, Hp).astype(jnp.float32)

    # Split the output projection so the kernel can skip the concat.
    wo = params["wo"]
    wo1 = pad2(wo[:hidden_dim], Hp, Op).astype(compute_dtype)
    wo2 = pad2(wo[hidden_dim:2 * hidden_dim], Hp, Op).astype(compute_dtype)
    wo3 = pad2(wo[2 * hidden_dim:], Hp, Op).astype(compute_dtype)
    bo = pad2(params["bo"], 1, Op).astype(jnp.float32)

    args = (adj_p, x_p, w1, b1, w2, b2, w3, b3, wo1, wo2, wo3, bo)

    # Advisory cost estimate for the XLA scheduler.
    flops = int(
        2 * Np * Np * (Ip + 2 * Hp)            # three aggregations A' @ h
        + 2 * Np * Ip * Hp + 4 * Np * Hp * Hp  # three GIN linears
        + 3 * 2 * Np * Hp * Op                 # split output projection
    )
    bytes_accessed = int(sum(a.size * a.dtype.itemsize for a in args)
                         + Np * Op * 4)
    cost = pl.CostEstimate(flops=flops, transcendentals=0,
                           bytes_accessed=bytes_accessed)

    out_p = pl.pallas_call(
        gnn_kernel,
        out_shape=jax.ShapeDtypeStruct((Np, Op), jnp.float32),
        # Whole (padded) arrays resident in VMEM; single kernel invocation.
        in_specs=[pl.BlockSpec(memory_space=pltpu.VMEM) for _ in args],
        out_specs=pl.BlockSpec(memory_space=pltpu.VMEM),
        compiler_params=pltpu.CompilerParams(
            vmem_limit_bytes=32 * 1024 * 1024),
        cost_estimate=cost,
    )(*args)

    # Strip padding (glue).
    return out_p[:N, :output_dim]


def init_params(key, input_dim, hidden_dim, output_dim):
    """Deterministic parameter init (uniform, PyTorch-Linear-like fan-in scale).

    Weights are stored [in_features, out_features]; biases as [1, out_features]."""
    def linear(key, fan_in, fan_out):
        kw, kb = jax.random.split(key)
        bound = 1.0 / (fan_in ** 0.5)
        w = jax.random.uniform(kw, (fan_in, fan_out), jnp.float32, -bound, bound)
        b = jax.random.uniform(kb, (1, fan_out), jnp.float32, -bound, bound)
        return w, b

    k1, k2, k3, ko = jax.random.split(key, 4)
    w1, b1 = linear(k1, input_dim, hidden_dim)
    w2, b2 = linear(k2, hidden_dim, hidden_dim)
    w3, b3 = linear(k3, hidden_dim, hidden_dim)
    wo, bo = linear(ko, hidden_dim * 3, output_dim)
    return dict(w1=w1, b1=b1, w2=w2, b2=b2, w3=w3, b3=b3, wo=wo, bo=bo)


def gnn_reference(adj, x, params, *, eps=0.0, compute_dtype=jnp.bfloat16):
    """Pure-JAX reference following the same mixed-precision path as the kernel
    (bf16 matmul operands, f32 accumulation / bias / ReLU)."""
    cdt = compute_dtype
    adj_aug = (adj + (1.0 + eps) * jnp.eye(adj.shape[0], dtype=adj.dtype)).astype(cdt)

    def gin(h, w, b):
        agg = jnp.dot(adj_aug, h.astype(cdt), preferred_element_type=jnp.float32)
        z = jnp.dot(agg.astype(cdt), w.astype(cdt),
                    preferred_element_type=jnp.float32) + b
        return jnp.maximum(z, 0.0)

    x1 = gin(x, params["w1"], params["b1"])
    x2 = gin(x1, params["w2"], params["b2"])
    x3 = gin(x2, params["w3"], params["b3"])
    cat = jnp.concatenate([x1, x2, x3], axis=1).astype(cdt)
    return jnp.dot(cat, params["wo"].astype(cdt),
                   preferred_element_type=jnp.float32) + params["bo"]


if __name__ == "__main__":
    N = 64            # number of nodes
    input_dim = 8
    hidden_dim = 32
    output_dim = 16

    key = jax.random.PRNGKey(0)
    k_x, k_adj, k_p = jax.random.split(key, 3)

    # Node features [N, input_dim]
    x = jax.random.normal(k_x, (N, input_dim), jnp.float32)

    # Deterministic symmetric 0/1 adjacency (no self loops) as dense [N, N]
    raw = jax.random.uniform(k_adj, (N, N))
    adj = (raw < 0.1).astype(jnp.float32)
    adj = jnp.maximum(adj, adj.T)
    adj = adj * (1.0 - jnp.eye(N, dtype=jnp.float32))

    params = init_params(k_p, input_dim, hidden_dim, output_dim)

    out = gnn_forward(adj, x, params)
    out = jax.block_until_ready(out)

    ref = gnn_reference(adj, x, params)
    assert out.shape == (N, output_dim)
    assert jnp.allclose(out, ref, atol=1e-2, rtol=1e-2), "mismatch vs reference"

    print("KERNEL_OK")
</pallas_src>

<mosaic_0001>
module attributes {stable_mosaic.version = 11 : i64} {
  func.func @gnn_kernel(%arg0: memref<128x128xbf16, #tpu.memory_space<vmem>>, %arg1: memref<128x128xbf16, #tpu.memory_space<vmem>>, %arg2: memref<128x128xbf16, #tpu.memory_space<vmem>>, %arg3: memref<1x128xf32, #tpu.memory_space<vmem>>, %arg4: memref<128x128xbf16, #tpu.memory_space<vmem>>, %arg5: memref<1x128xf32, #tpu.memory_space<vmem>>, %arg6: memref<128x128xbf16, #tpu.memory_space<vmem>>, %arg7: memref<1x128xf32, #tpu.memory_space<vmem>>, %arg8: memref<128x128xbf16, #tpu.memory_space<vmem>>, %arg9: memref<128x128xbf16, #tpu.memory_space<vmem>>, %arg10: memref<128x128xbf16, #tpu.memory_space<vmem>>, %arg11: memref<1x128xf32, #tpu.memory_space<vmem>>, %arg12: memref<128x128xf32, #tpu.memory_space<vmem>>) attributes {dimension_semantics = [], scalar_prefetch = 0 : i64, scratch_operands = 0 : i64, tpu.core_type = #tpu.core_type<tc>} {
    %c0 = arith.constant 0 : index
    %c0_0 = arith.constant 0 : index
    %0 = vector.load %arg0[%c0, %c0_0] : memref<128x128xbf16, #tpu.memory_space<vmem>>, vector<128x128xbf16>
    %c0_1 = arith.constant 0 : index
    %c0_2 = arith.constant 0 : index
    %1 = vector.load %arg1[%c0_1, %c0_2] : memref<128x128xbf16, #tpu.memory_space<vmem>>, vector<128x128xbf16>
    %cst = arith.constant dense<0.000000e+00> : vector<128x128xf32>
    %2 = tpu.matmul %0, %1, %cst {dimension_numbers = #tpu.dot_dimension_numbers<[1], [0], [0], [1], [0, 0, 1, 1], [], []>} : vector<128x128xbf16>, vector<128x128xbf16>, vector<128x128xf32> -> vector<128x128xf32>
    %3 = arith.truncf %2 : vector<128x128xf32> to vector<128x128xbf16>
    %c0_3 = arith.constant 0 : index
    %c0_4 = arith.constant 0 : index
    %4 = vector.load %arg2[%c0_3, %c0_4] : memref<128x128xbf16, #tpu.memory_space<vmem>>, vector<128x128xbf16>
    %cst_5 = arith.constant dense<0.000000e+00> : vector<128x128xf32>
    %5 = tpu.matmul %3, %4, %cst_5 {dimension_numbers = #tpu.dot_dimension_numbers<[1], [0], [0], [1], [0, 0, 1, 1], [], []>} : vector<128x128xbf16>, vector<128x128xbf16>, vector<128x128xf32> -> vector<128x128xf32>
    %c0_6 = arith.constant 0 : index
    %c0_7 = arith.constant 0 : index
    %6 = vector.load %arg3[%c0_6, %c0_7] : memref<1x128xf32, #tpu.memory_space<vmem>>, vector<1x128xf32>
    %7 = vector.broadcast %6 : vector<1x128xf32> to vector<128x128xf32>
    %8 = arith.addf %5, %7 : vector<128x128xf32>
    %cst_8 = arith.constant 0.000000e+00 : f32
    %9 = vector.broadcast %cst_8 : f32 to vector<128x128xf32>
    %10 = arith.maximumf %8, %9 : vector<128x128xf32>
    %11 = arith.truncf %10 : vector<128x128xf32> to vector<128x128xbf16>
    %cst_9 = arith.constant dense<0.000000e+00> : vector<128x128xf32>
    %12 = tpu.matmul %0, %11, %cst_9 {dimension_numbers = #tpu.dot_dimension_numbers<[1], [0], [0], [1], [0, 0, 1, 1], [], []>} : vector<128x128xbf16>, vector<128x128xbf16>, vector<128x128xf32> -> vector<128x128xf32>
    %13 = arith.truncf %12 : vector<128x128xf32> to vector<128x128xbf16>
    %c0_10 = arith.constant 0 : index
    %c0_11 = arith.constant 0 : index
    %14 = vector.load %arg4[%c0_10, %c0_11] : memref<128x128xbf16, #tpu.memory_space<vmem>>, vector<128x128xbf16>
    %cst_12 = arith.constant dense<0.000000e+00> : vector<128x128xf32>
    %15 = tpu.matmul %13, %14, %cst_12 {dimension_numbers = #tpu.dot_dimension_numbers<[1], [0], [0], [1], [0, 0, 1, 1], [], []>} : vector<128x128xbf16>, vector<128x128xbf16>, vector<128x128xf32> -> vector<128x128xf32>
    %c0_13 = arith.constant 0 : index
    %c0_14 = arith.constant 0 : index
    %16 = vector.load %arg5[%c0_13, %c0_14] : memref<1x128xf32, #tpu.memory_space<vmem>>, vector<1x128xf32>
    %17 = vector.broadcast %16 : vector<1x128xf32> to vector<128x128xf32>
    %18 = arith.addf %15, %17 : vector<128x128xf32>
    %cst_15 = arith.constant 0.000000e+00 : f32
    %19 = vector.broadcast %cst_15 : f32 to vector<128x128xf32>
    %20 = arith.maximumf %18, %19 : vector<128x128xf32>
    %21 = arith.truncf %20 : vector<128x128xf32> to vector<128x128xbf16>
    %cst_16 = arith.constant dense<0.000000e+00> : vector<128x128xf32>
    %22 = tpu.matmul %0, %21, %cst_16 {dimension_numbers = #tpu.dot_dimension_numbers<[1], [0], [0], [1], [0, 0, 1, 1], [], []>} : vector<128x128xbf16>, vector<128x128xbf16>, vector<128x128xf32> -> vector<128x128xf32>
    %23 = arith.truncf %22 : vector<128x128xf32> to vector<128x128xbf16>
    %c0_17 = arith.constant 0 : index
    %c0_18 = arith.constant 0 : index
    %24 = vector.load %arg6[%c0_17, %c0_18] : memref<128x128xbf16, #tpu.memory_space<vmem>>, vector<128x128xbf16>
    %cst_19 = arith.constant dense<0.000000e+00> : vector<128x128xf32>
    %25 = tpu.matmul %23, %24, %cst_19 {dimension_numbers = #tpu.dot_dimension_numbers<[1], [0], [0], [1], [0, 0, 1, 1], [], []>} : vector<128x128xbf16>, vector<128x128xbf16>, vector<128x128xf32> -> vector<128x128xf32>
    %c0_20 = arith.constant 0 : index
    %c0_21 = arith.constant 0 : index
    %26 = vector.load %arg7[%c0_20, %c0_21] : memref<1x128xf32, #tpu.memory_space<vmem>>, vector<1x128xf32>
    %27 = vector.broadcast %26 : vector<1x128xf32> to vector<128x128xf32>
    %28 = arith.addf %25, %27 : vector<128x128xf32>
    %cst_22 = arith.constant 0.000000e+00 : f32
    %29 = vector.broadcast %cst_22 : f32 to vector<128x128xf32>
    %30 = arith.maximumf %28, %29 : vector<128x128xf32>
    %31 = arith.truncf %30 : vector<128x128xf32> to vector<128x128xbf16>
    %c0_23 = arith.constant 0 : index
    %c0_24 = arith.constant 0 : index
    %32 = vector.load %arg8[%c0_23, %c0_24] : memref<128x128xbf16, #tpu.memory_space<vmem>>, vector<128x128xbf16>
    %cst_25 = arith.constant dense<0.000000e+00> : vector<128x128xf32>
    %33 = tpu.matmul %11, %32, %cst_25 {dimension_numbers = #tpu.dot_dimension_numbers<[1], [0], [0], [1], [0, 0, 1, 1], [], []>} : vector<128x128xbf16>, vector<128x128xbf16>, vector<128x128xf32> -> vector<128x128xf32>
    %c0_26 = arith.constant 0 : index
    %c0_27 = arith.constant 0 : index
    %34 = vector.load %arg9[%c0_26, %c0_27] : memref<128x128xbf16, #tpu.memory_space<vmem>>, vector<128x128xbf16>
    %cst_28 = arith.constant dense<0.000000e+00> : vector<128x128xf32>
    %35 = tpu.matmul %21, %34, %cst_28 {dimension_numbers = #tpu.dot_dimension_numbers<[1], [0], [0], [1], [0, 0, 1, 1], [], []>} : vector<128x128xbf16>, vector<128x128xbf16>, vector<128x128xf32> -> vector<128x128xf32>
    %36 = arith.addf %33, %35 : vector<128x128xf32>
    %c0_29 = arith.constant 0 : index
    %c0_30 = arith.constant 0 : index
    %37 = vector.load %arg10[%c0_29, %c0_30] : memref<128x128xbf16, #tpu.memory_space<vmem>>, vector<128x128xbf16>
    %cst_31 = arith.constant dense<0.000000e+00> : vector<128x128xf32>
    %38 = tpu.matmul %31, %37, %cst_31 {dimension_numbers = #tpu.dot_dimension_numbers<[1], [0], [0], [1], [0, 0, 1, 1], [], []>} : vector<128x128xbf16>, vector<128x128xbf16>, vector<128x128xf32> -> vector<128x128xf32>
    %39 = arith.addf %36, %38 : vector<128x128xf32>
    %c0_32 = arith.constant 0 : index
    %c0_33 = arith.constant 0 : index
    %40 = vector.load %arg11[%c0_32, %c0_33] : memref<1x128xf32, #tpu.memory_space<vmem>>, vector<1x128xf32>
    %41 = vector.broadcast %40 : vector<1x128xf32> to vector<128x128xf32>
    %42 = arith.addf %39, %41 : vector<128x128xf32>
    %c0_34 = arith.constant 0 : index
    %c0_35 = arith.constant 0 : index
    %43 = vector.load %arg12[%c0_34, %c0_35] : memref<128x128xf32, #tpu.memory_space<vmem>>, vector<128x128xf32>
    tpu.vector_store %arg12[%c0_34, %c0_35], %42 {strides = array<i32>} : memref<128x128xf32, #tpu.memory_space<vmem>>, vector<128x128xf32>,
    return
  }
}

</mosaic_0001>

<bundles_post_ra>
// kernel: tpu_custom_call.1
= control target key start
LH: loop header
LB: loop body
LE: loop exit
PB: predicated region body
PF: predicated region fallthrough
CT: control target
= control target key end

     0   :  { %17 = vsyncpa [#allocation3], 0  ;;  %s2823_s0 = inlined_call_operand.hbm [shape: bf16[128,128], index: 0, kind: input, shape index: {}]   ;;  %s2824_s1 = inlined_call_operand.hbm [shape: bf16[128,128], index: 1, kind: input, shape index: {}]   ;;  %s2825_s2 = inlined_call_operand.hbm [shape: bf16[128,128], index: 2, kind: input, shape index: {}]   ;;  %s2826_s3 = inlined_call_operand.vmem [shape: f32[1,128], index: 3, kind: input, shape index: {}]   ;;  %s2827_s4 = inlined_call_operand.hbm [shape: bf16[128,128], index: 4, kind: input, shape index: {}]   ;;  %s2828_s5 = inlined_call_operand.vmem [shape: f32[1,128], index: 5, kind: input, shape index: {}]   ;;  %s2829_s6 = inlined_call_operand.hbm [shape: bf16[128,128], index: 6, kind: input, shape index: {}]   ;;  %s2830_s7 = inlined_call_operand.vmem [shape: f32[1,128], index: 7, kind: input, shape index: {}]   ;;  %s2831_s8 = inlined_call_operand.hbm [shape: bf16[128,128], index: 8, kind: input, shape index: {}]   ;;  %s2832_s9 = inlined_call_operand.hbm [shape: bf16[128,128], index: 9, kind: input, shape index: {}]   ;;  %s2833_s10 = inlined_call_operand.hbm [shape: bf16[128,128], index: 10, kind: input, shape index: {}]   ;;  %s2834_s11 = inlined_call_operand.vmem [shape: f32[1,128], index: 11, kind: input, shape index: {}]   ;;  %s2835_s12 = inlined_call_operand.hbm [shape: f32[128,128], index: 12, kind: output, shape index: {}]  }
   0x1   :  { %18 = vsyncpa [#allocation6], 0 }
   0x2   :  { %19 = vsyncpa [#allocation9], 0 }
   0x3   :  { %20 = vsyncpa [#allocation12], 0 }
   0x4   :  { %21 = vsyncpa [#allocation15], 0 }
   0x5   :  { %22 = vsyncpa [#allocation4], 0  ;;  %s2515_s21 = smov [#allocation5]   ;;  %s2516_s23 = smov [#allocation8]  }
   0x6   :  { %s40_s22 = sshll.u32 %s2515_s21, 4  ;;  %s66_s24 = sshll.u32 %s2516_s23, 4  ;;  %s41_s22 = int_to_ptr.vmem [resolvable:$true] %s40_s22  ;;  %s67_s24 = int_to_ptr.vmem [resolvable:$true] %s66_s24 }
   0x7   :  { %s2331_s25 = scalar_lea.vmem %s41_s22, 1024  ;;  %p2336_p1 = scmp.lt.s32.totalorder %s41_s22, %s41_s22 }
   0x8   :  { %p2332_p0 = scmp.ne.s32.totalorder %s41_s22, %s2331_s25  ;;  %p2337_p2 = scmp.lt.s32.totalorder %s2331_s25, %s2331_s25 }
   0xa   :  { %p2338_p3 = por %p2337_p2, %p2336_p1 }
   0xc   :  { %p2339_p4 = pnand %p2338_p3, %p2332_p0 }
   0xe   :  { %2342 = shalt.err (!%p2339_p4)
}
   0xf   :  { %s2517_s26 = smov 64   ;;  %s2518_s27 = smov 4  }
  0x10   :  { %46 = dma.hbm_to_vmem [thread:$0]  %s2824_s1, 1024, %s41_s22, [#allocation6], %s2517_s26, %s2517_s26, %s2518_s27  }
  0x11   :  { %s2351_s30 = scalar_lea.vmem %s67_s24, 1024  ;;  %p2356_p6 = scmp.lt.s32.totalorder %s67_s24, %s67_s24 }
  0x12   :  { %p2352_p5 = scmp.ne.s32.totalorder %s67_s24, %s2351_s30  ;;  %p2357_p7 = scmp.lt.s32.totalorder %s2351_s30, %s2351_s30 }
  0x14   :  { %p2358_p8 = por %p2357_p7, %p2356_p6 }
  0x16   :  { %p2359_p9 = pnand %p2358_p8, %p2352_p5 }
  0x18   :  { %2362 = shalt.err (!%p2359_p9)
}
  0x19   :  { %72 = dma.hbm_to_vmem [thread:$0]  %s2827_s4, 1024, %s67_s24, [#allocation9], %s2517_s26, %s2517_s26, %s2518_s27  }
  0x1a   :  { %s2519_s15 = smov [#allocation11]   ;;  %s2520_s17 = smov [#allocation2]  }
  0x1b   :  { %s94_s16 = sshll.u32 %s2519_s15, 4  ;;  %s28_s18 = sshll.u32 %s2520_s17, 4  ;;  %s95_s16 = int_to_ptr.vmem [resolvable:$true] %s94_s16  ;;  %s29_s18 = int_to_ptr.vmem [resolvable:$true] %s28_s18 }
  0x1c   :  { %s2371_s1 = scalar_lea.vmem %s95_s16, 1024  ;;  %p2376_p11 = scmp.lt.s32.totalorder %s95_s16, %s95_s16 }
  0x1d   :  { %p2372_p10 = scmp.ne.s32.totalorder %s95_s16, %s2371_s1  ;;  %p2377_p12 = scmp.lt.s32.totalorder %s2371_s1, %s2371_s1 }
  0x1f   :  { %p2378_p13 = por %p2377_p12, %p2376_p11 }
  0x21   :  { %p2379_p0 = pnand %p2378_p13, %p2372_p10 }
  0x23   :  { %2382 = shalt.err (!%p2379_p0)
}
  0x24   :  { %100 = dma.hbm_to_vmem [thread:$0]  %s2831_s8, 1024, %s95_s16, [#allocation12], %s2517_s26, %s2517_s26, %s2518_s27  }
  0x25   :  { %s2391_s4 = scalar_lea.vmem %s29_s18, 1024  ;;  %p2396_p2 = scmp.lt.s32.totalorder %s29_s18, %s29_s18 }
  0x26   :  { %p2392_p1 = scmp.ne.s32.totalorder %s29_s18, %s2391_s4  ;;  %p2397_p3 = scmp.lt.s32.totalorder %s2391_s4, %s2391_s4 }
  0x28   :  { %p2398_p4 = por %p2397_p3, %p2396_p2 }
  0x2a   :  { %p2399_p5 = pnand %p2398_p4, %p2392_p1 }
  0x2c   :  { %2402 = shalt.err (!%p2399_p5)
}
  0x2d   :  { %34 = dma.hbm_to_vmem [thread:$0]  %s2823_s0, 1024, %s29_s18, [#allocation3], %s2517_s26, %s2517_s26, %s2518_s27  }
  0x2e   :  { %s2521_s23 = smov [#allocation7]   ;;  %s2522_s25 = smov [#allocation10]  }
  0x2f   :  { %s52_s24 = sshll.u32 %s2521_s23, 4  ;;  %s80_s28 = sshll.u32 %s2522_s25, 4  ;;  %s53_s24 = int_to_ptr.vmem [resolvable:$true] %s52_s24  ;;  %s81_s28 = int_to_ptr.vmem [resolvable:$true] %s80_s28 }
  0x30   :  { %s2411_s8 = scalar_lea.vmem %s53_s24, 1024  ;;  %p2416_p7 = scmp.lt.s32.totalorder %s53_s24, %s53_s24 }
  0x31   :  { %p2412_p6 = scmp.ne.s32.totalorder %s53_s24, %s2411_s8  ;;  %p2417_p8 = scmp.lt.s32.totalorder %s2411_s8, %s2411_s8 }
  0x33   :  { %p2418_p9 = por %p2417_p8, %p2416_p7 }
  0x35   :  { %p2419_p10 = pnand %p2418_p9, %p2412_p6 }
  0x37   :  { %2422 = shalt.err (!%p2419_p10)
}
  0x38   :  { %58 = dma.hbm_to_vmem [thread:$0]  %s2825_s2, 1024, %s53_s24, [#allocation6], %s2517_s26, %s2517_s26, %s2518_s27  }
  0x39   :  { %s2431_s0 = scalar_lea.vmem %s81_s28, 1024  ;;  %p2436_p12 = scmp.lt.s32.totalorder %s81_s28, %s81_s28 }
  0x3a   :  { %p2432_p11 = scmp.ne.s32.totalorder %s81_s28, %s2431_s0  ;;  %p2437_p13 = scmp.lt.s32.totalorder %s2431_s0, %s2431_s0 }
  0x3c   :  { %p2438_p0 = por %p2437_p13, %p2436_p12 }
  0x3e   :  { %p2439_p1 = pnand %p2438_p0, %p2432_p11 }
  0x40   :  { %2442 = shalt.err (!%p2439_p1)
}
  0x41   :  { %86 = dma.hbm_to_vmem [thread:$0]  %s2829_s6, 1024, %s81_s28, [#allocation9], %s2517_s26, %s2517_s26, %s2518_s27  }
  0x42   :  { %s2523_s15 = smov [#allocation13]   ;;  %s2524_s17 = smov [#allocation14]  }
  0x43   :  { %s106_s16 = sshll.u32 %s2523_s15, 4  ;;  %s118_s18 = sshll.u32 %s2524_s17, 4  ;;  %s107_s16 = int_to_ptr.vmem [resolvable:$true] %s106_s16  ;;  %s119_s18 = int_to_ptr.vmem [resolvable:$true] %s118_s18 }
  0x44   :  { %s2451_s2 = scalar_lea.vmem %s107_s16, 1024  ;;  %p2456_p3 = scmp.lt.s32.totalorder %s107_s16, %s107_s16 }
  0x45   :  { %p2452_p2 = scmp.ne.s32.totalorder %s107_s16, %s2451_s2  ;;  %p2457_p4 = scmp.lt.s32.totalorder %s2451_s2, %s2451_s2 }
  0x47   :  { %p2458_p5 = por %p2457_p4, %p2456_p3 }
  0x49   :  { %p2459_p6 = pnand %p2458_p5, %p2452_p2 }
  0x4b   :  { %2462 = shalt.err (!%p2459_p6)
}
  0x4c   :  { %112 = dma.hbm_to_vmem [thread:$0]  %s2832_s9, 1024, %s107_s16, [#allocation12], %s2517_s26, %s2517_s26, %s2518_s27  }
  0x4d   :  { %s2471_s6 = scalar_lea.vmem %s119_s18, 1024  ;;  %p2476_p8 = scmp.lt.s32.totalorder %s119_s18, %s119_s18 }
  0x4e   :  { %p2472_p7 = scmp.ne.s32.totalorder %s119_s18, %s2471_s6  ;;  %p2477_p9 = scmp.lt.s32.totalorder %s2471_s6, %s2471_s6 }
  0x50   :  { %p2478_p10 = por %p2477_p9, %p2476_p8 }
  0x52   :  { %p2479_p11 = pnand %p2478_p10, %p2472_p7 }
  0x54   :  { %2482 = shalt.err (!%p2479_p11)
}
  0x55   :  { %124 = dma.hbm_to_vmem [thread:$0]  %s2833_s10, 1024, %s119_s18, [#allocation15], %s2517_s26, %s2517_s26, %s2518_s27  }
  0x56   :  { %2503 = dma.done.wait [#allocation3], 1024  }
  0x57   :  { %2504 = vsyncadd [#allocation3], 4294966272 }
  0x58   :  { %2505 = dma.done.wait [#allocation6], 2048  }
  0x59   :  { %2506 = vsyncadd [#allocation6], 4294965248 }
  0x5a   :  { %2507 = dma.done.wait [#allocation9], 2048  }
  0x5b   :  { %2508 = vsyncadd [#allocation9], 4294965248 }
  0x5c   :  { %2509 = dma.done.wait [#allocation12], 2048  }
  0x5d   :  { %2510 = vsyncadd [#allocation12], 4294965248 }
  0x5e   :  { %2511 = dma.done.wait [#allocation15], 1024  }
  0x5f   :  { %2512 = vsyncadd [#allocation15], 4294966272  ;;  %v2259_v0 = vld [vmem:[#allocation5 + $0x38] sm:$0xff]   ;;  %v2260_v1 = vld [vmem:[#allocation5 + $0x30] sm:$0xff]  }
  0x60   :  { %1942 = vmatprep.subr.bf16.mxu0 %v2259_v0  ;;  %v2261_v2 = vld [vmem:[#allocation5 + $0x28] sm:$0xff]   ;;  %v2262_v3 = vld [vmem:[#allocation5 + $0x20] sm:$0xff]   ;;  %v2263_v5 = vld [vmem:[#allocation5 + $0x18] sm:$0xff]  }
  0x61   :  { %1943 = vmatpush3.bf16.msra.mxu0 %v2259_v0  ;;  %v2641_v4 = vld [vmem:[#allocation2] sm:$0xff]   ;;  %v2264_v6 = vld [vmem:[#allocation5 + $0x10] sm:$0xff]   ;;  %v2275_v7 = vld [vmem:[#allocation7 + $0x38] sm:$0xff]  }
  0x62   :  { %1944 = vmatprep.subr.bf16.mxu0 %v2260_v1  ;;  %1958 = vmatprep.mubr.bf16.mxu0 %v2641_v4  ;;  %v2276_v8 = vld [vmem:[#allocation7 + $0x30] sm:$0xff]   ;;  %v2265_v9 = vld [vmem:[#allocation5 + $0x8] sm:$0xff]   ;;  %v2266_v11 = vld [vmem:[#allocation5] sm:$0xff]  }
  0x63   :  { %1974 = vmatprep.subr.bf16.mxu1 %v2275_v7  ;;  %v2277_v10 = vld [vmem:[#allocation7 + $0x28] sm:$0xff]   ;;  %v2278_v12 = vld [vmem:[#allocation7 + $0x20] sm:$0xff]   ;;  %v2279_v13 = vld [vmem:[#allocation7 + $0x18] sm:$0xff]  }
  0x64   :  { %1975 = vmatpush3.bf16.msra.mxu1 %v2275_v7  ;;  %v2644_v14 = vld [vmem:[#allocation2 + $0x8] sm:$0xff]   ;;  %v2646_v15 = vld [vmem:[#allocation2 + $0x10] sm:$0xff]   ;;  %v2650_v17 = vld [vmem:[#allocation2 + $0x18] sm:$0xff]  }
  0x65   :  { %1945 = vmatpush3.bf16.msra.mxu0 %v2260_v1  ;;  %1976 = vmatprep.subr.bf16.mxu1 %v2276_v8  ;;  %v2280_v16 = vld [vmem:[#allocation7 + $0x10] sm:$0xff]   ;;  %v2652_v18 = vld [vmem:[#allocation2 + $0x20] sm:$0xff]   ;;  %v2656_v19 = vld [vmem:[#allocation2 + $0x28] sm:$0xff]  }
  0x66   :  { %1946 = vmatprep.subr.bf16.mxu0 %v2261_v2  ;;  %v2658_v20 = vld [vmem:[#allocation2 + $0x30] sm:$0xff]   ;;  %v2662_v21 = vld [vmem:[#allocation2 + $0x38] sm:$0xff]   ;;  %v2281_v22 = vld [vmem:[#allocation7 + $0x8] sm:$0xff]  }
  0x67   :  { %v2282_v23 = vld [vmem:[#allocation7] sm:$0xff]   ;;  %v2283_v48 = vld [vmem:[#allocation8 + $0x38] sm:$0xff]   ;;  %v2284_v49 = vld [vmem:[#allocation8 + $0x30] sm:$0xff]  }
  0x68   :  { %1977 = vmatpush3.bf16.msra.mxu1 %v2276_v8  ;;  %v2285_v50 = vld [vmem:[#allocation8 + $0x28] sm:$0xff]   ;;  %v2286_v51 = vld [vmem:[#allocation8 + $0x20] sm:$0xff]   ;;  %v2287_v52 = vld [vmem:[#allocation8 + $0x18] sm:$0xff]  }
  0x69   :  { %1947 = vmatpush3.bf16.msra.mxu0 %v2261_v2  ;;  %1978 = vmatprep.subr.bf16.mxu1 %v2277_v10  ;;  %v2288_v53 = vld [vmem:[#allocation8 + $0x10] sm:$0xff]  }
  0x6a   :  { %1948 = vmatprep.subr.bf16.mxu0 %v2262_v3 }
  0x6c   :  { %1979 = vmatpush3.bf16.msra.mxu1 %v2277_v10 }
  0x6d   :  { %1949 = vmatpush3.bf16.msra.mxu0 %v2262_v3  ;;  %1980 = vmatprep.subr.bf16.mxu1 %v2278_v12  ;;  %v1746_v3 = vld [vmem:[%s2826_s3] ss:$0 sm:$0xff] }
  0x6e   :  { %1950 = vmatprep.subr.bf16.mxu0 %v2263_v5 }
  0x70   :  { %1981 = vmatpush3.bf16.msra.mxu1 %v2278_v12 }
  0x71   :  { %1951 = vmatpush3.bf16.msra.mxu0 %v2263_v5  ;;  %1982 = vmatprep.subr.bf16.mxu1 %v2279_v13 }
  0x72   :  { %1952 = vmatprep.subr.bf16.mxu0 %v2264_v6 }
  0x74   :  { %1983 = vmatpush3.bf16.msra.mxu1 %v2279_v13 }
  0x75   :  { %1953 = vmatpush3.bf16.msra.mxu0 %v2264_v6  ;;  %1984 = vmatprep.subr.bf16.mxu1 %v2280_v16 }
  0x76   :  { %1954 = vmatprep.subr.bf16.mxu0 %v2265_v9 }
  0x78   :  { %1985 = vmatpush3.bf16.msra.mxu1 %v2280_v16 }
  0x79   :  { %1955 = vmatpush3.bf16.msra.mxu0 %v2265_v9  ;;  %1986 = vmatprep.subr.bf16.mxu1 %v2281_v22 }
  0x7a   :  { %1956 = vmatprep.subr.bf16.mxu0 %v2266_v11 }
  0x7c   :  { %1987 = vmatpush3.bf16.msra.mxu1 %v2281_v22 }
  0x7d   :  { %1957 = vmatpush3.bf16.msra.mxu0 %v2266_v11  ;;  %1988 = vmatprep.subr.bf16.mxu1 %v2282_v23 }
  0x80   :  { %1959 = vmatmul.mubr.bf16.vlgmr.msra.gmra.mxu0 %v2644_v14  ;;  %1989 = vmatpush3.bf16.msra.mxu1 %v2282_v23 }
  0x81   :  { %1962 = vmatprep.mubr.bf16.mxu0 %v2646_v15  ;;  %2038 = vmatprep.subr.bf16.mxu1 %v2283_v48 }
  0x88   :  { %1963 = vmatmul.mubr.bf16.gmra.mxu0 %v2650_v17 }
  0x89   :  { %1966 = vmatprep.mubr.bf16.mxu0 %v2652_v18 }
  0x90   :  { %1967 = vmatmul.mubr.bf16.gmra.mxu0 %v2656_v19 }
  0x91   :  { %1970 = vmatprep.mubr.bf16.mxu0 %v2658_v20 }
  0x98   :  { %1971 = vmatmul.mubr.bf16.gmra.mxu0 %v2662_v21 }
  0x99   :  { %2022 = vmatprep.mubr.bf16.mxu0 %v2641_v4 }
 0x140   :  { %v1960_v24 = vpop.f32.mrf.mxu0 }
 0x142   :  { %v314_v25 = vpop.f32.mrf.mxu0 }
 0x144   :  { %v1961_v26 = vpop.f32.mrf.mxu0 }
 0x145   :  { %v378_v29 = vpack.c.bf16 %v1961_v26, %v1960_v24 }
 0x146   :  { %v317_v27 = vpop.f32.mrf.mxu0 }
 0x147   :  { %v377_v28 = vpack.c.bf16 %v317_v27, %v314_v25 }
 0x148   :  { %v1964_v30 = vpop.f32.mrf.mxu0 }
 0x149   :  { %1990 = vmatprep.mubr.bf16.mxu1 %v377_v28 }
 0x14a   :  { %v330_v31 = vpop.f32.mrf.mxu0  ;;  %1991 = vmatmul.mubr.bf16.vlgmr.msra.gmra.mxu1 %v378_v29 }
 0x14b   :  { %2039 = vmatpush3.bf16.msra.mxu1 %v2283_v48 }
 0x14c   :  { %v1965_v32 = vpop.f32.mrf.mxu0  ;;  %2040 = vmatprep.subr.bf16.mxu1 %v2284_v49 }
 0x14d   :  { %v380_v35 = vpack.c.bf16 %v1965_v32, %v1964_v30 }
 0x14e   :  { %v333_v33 = vpop.f32.mrf.mxu0 }
 0x14f   :  { %v379_v34 = vpack.c.bf16 %v333_v33, %v330_v31  ;;  %2041 = vmatpush3.bf16.msra.mxu1 %v2284_v49 }
 0x150   :  { %v1968_v36 = vpop.f32.mrf.mxu0  ;;  %2042 = vmatprep.subr.bf16.mxu1 %v2285_v50 }
 0x151   :  { %1994 = vmatprep.mubr.bf16.mxu1 %v379_v34 }
 0x152   :  { %v346_v37 = vpop.f32.mrf.mxu0  ;;  %1995 = vmatmul.mubr.bf16.gmra.mxu1 %v380_v35 }
 0x153   :  { %2043 = vmatpush3.bf16.msra.mxu1 %v2285_v50 }
 0x154   :  { %v1969_v38 = vpop.f32.mrf.mxu0  ;;  %2044 = vmatprep.subr.bf16.mxu1 %v2286_v51 }
 0x155   :  { %v382_v41 = vpack.c.bf16 %v1969_v38, %v1968_v36 }
 0x156   :  { %v349_v39 = vpop.f32.mrf.mxu0 }
 0x157   :  { %v381_v40 = vpack.c.bf16 %v349_v39, %v346_v37  ;;  %2045 = vmatpush3.bf16.msra.mxu1 %v2286_v51 }
 0x158   :  { %v1972_v42 = vpop.f32.mrf.mxu0  ;;  %2046 = vmatprep.subr.bf16.mxu1 %v2287_v52 }
 0x159   :  { %1998 = vmatprep.mubr.bf16.mxu1 %v381_v40 }
 0x15a   :  { %v362_v43 = vpop.f32.mrf.mxu0  ;;  %1999 = vmatmul.mubr.bf16.gmra.mxu1 %v382_v41 }
 0x15b   :  { %2047 = vmatpush3.bf16.msra.mxu1 %v2287_v52 }
 0x15c   :  { %v1973_v44 = vpop.f32.mrf.mxu0  ;;  %2048 = vmatprep.subr.bf16.mxu1 %v2288_v53 }
 0x15d   :  { %v384_v47 = vpack.c.bf16 %v1973_v44, %v1972_v42 }
 0x15e   :  { %v365_v45 = vpop.f32.mrf.mxu0 }
 0x15f   :  { %v383_v46 = vpack.c.bf16 %v365_v45, %v362_v43  ;;  %2049 = vmatpush3.bf16.msra.mxu1 %v2288_v53 }
 0x161   :  { %2002 = vmatprep.mubr.bf16.mxu1 %v383_v46 }
 0x162   :  { %2003 = vmatmul.mubr.bf16.gmra.mxu1 %v384_v47 }
 0x20a   :  { %v1992_v54 = vpop.f32.mrf.mxu1 }
 0x20b   :  { %v499_v44 = vadd.f32 %v1992_v54, %v1746_v3 }
 0x20c   :  { %v490_v55 = vpop.f32.mrf.mxu1 }
 0x20d   :  { %v555_v49 = vmax.f32 %v499_v44, 0.0  ;;  %v491_v50 = vadd.f32 %v1746_v3, %v490_v55  ;;  %v2289_v55 = vld [vmem:[#allocation8 + $0x8] sm:$0xff]  }
 0x20e   :  { %v1993_v56 = vpop.f32.mrf.mxu1  ;;  %2050 = vmatprep.subr.bf16.mxu1 %v2289_v55 }
 0x20f   :  { %v502_v41 = vadd.f32 %v1993_v56, %v1746_v3  ;;  %v553_v53 = vmax.f32 %v491_v50, 0.0  ;;  %2051 = vmatpush3.bf16.msra.mxu1 %v2289_v55  ;;  %v2290_v56 = vld [vmem:[#allocation8] sm:$0xff]  }
 0x210   :  { %v493_v57 = vpop.f32.mrf.mxu1  ;;  %2052 = vmatprep.subr.bf16.mxu1 %v2290_v56 }
 0x211   :  { %v556_v46 = vmax.f32 %v502_v41, 0.0  ;;  %v494_v47 = vadd.f32 %v1746_v3, %v493_v57 }
 0x212   :  { %v1996_v58 = vpop.f32.mrf.mxu1 }
 0x213   :  { %v515_v34 = vadd.f32 %v1996_v58, %v1746_v3  ;;  %v2692_v51 = vpack.c.bf16 %v556_v46, %v555_v49  ;;  %v554_v52 = vmax.f32 %v494_v47, 0.0  ;;  %2053 = vmatpush3.bf16.msra.mxu1 %v2290_v56  ;;  %v1755_v49 = vld [vmem:[%s2828_s5] ss:$0 sm:$0xff] }
 0x214   :  { %v506_v59 = vpop.f32.mrf.mxu1 }
 0x215   :  { %v559_v39 = vmax.f32 %v515_v34, 0.0  ;;  %v507_v40 = vadd.f32 %v1746_v3, %v506_v59  ;;  %v2696_v54 = vpack.c.bf16 %v554_v52, %v553_v53 }
 0x216   :  { %v1997_v60 = vpop.f32.mrf.mxu1 }
 0x217   :  { %v518_v31 = vadd.f32 %v1997_v60, %v1746_v3  ;;  %v557_v45 = vmax.f32 %v507_v40, 0.0 }
 0x218   :  { %v509_v61 = vpop.f32.mrf.mxu1 }
 0x219   :  { %v560_v36 = vmax.f32 %v518_v31, 0.0  ;;  %v510_v37 = vadd.f32 %v1746_v3, %v509_v61  ;;  %v2302_v31 = vld [vmem:[#allocation10 + $0x20] sm:$0xff]  }
 0x21a   :  { %v2000_v62 = vpop.f32.mrf.mxu1 }
 0x21b   :  { %v531_v22 = vadd.f32 %v2000_v62, %v1746_v3  ;;  %v2684_v42 = vpack.c.bf16 %v560_v36, %v559_v39  ;;  %v558_v43 = vmax.f32 %v510_v37, 0.0  ;;  %v2304_v39 = vld [vmem:[#allocation10 + $0x10] sm:$0xff]  }
 0x21c   :  { %v522_v63 = vpop.f32.mrf.mxu1 }
 0x21d   :  { %v563_v29 = vmax.f32 %v531_v22, 0.0  ;;  %v523_v30 = vadd.f32 %v1746_v3, %v522_v63  ;;  %v2688_v48 = vpack.c.bf16 %v558_v43, %v557_v45 }
 0x21e   :  { %v2001_v0 = vpop.f32.mrf.mxu1 }
 0x21f   :  { %v534_v11 = vadd.f32 %v2001_v0, %v1746_v3  ;;  %v561_v35 = vmax.f32 %v523_v30, 0.0 }
 0x220   :  { %v525_v1 = vpop.f32.mrf.mxu1 }
 0x221   :  { %v564_v26 = vmax.f32 %v534_v11, 0.0  ;;  %v526_v27 = vadd.f32 %v1746_v3, %v525_v1 }
 0x222   :  { %v2004_v2 = vpop.f32.mrf.mxu1 }
 0x223   :  { %v547_v6 = vadd.f32 %v2004_v2, %v1746_v3  ;;  %v2676_v32 = vpack.c.bf16 %v564_v26, %v563_v29  ;;  %v562_v33 = vmax.f32 %v526_v27, 0.0  ;;  %v2300_v26 = vld [vmem:[#allocation10 + $0x30] sm:$0xff]   ;;  %v2301_v27 = vld [vmem:[#allocation10 + $0x28] sm:$0xff]  }
 0x224   :  { %v538_v5 = vpop.f32.mrf.mxu1 }
 0x225   :  { %v539_v8 = vadd.f32 %v1746_v3, %v538_v5  ;;  %v567_v12 = vmax.f32 %v547_v6, 0.0  ;;  %v2680_v38 = vpack.c.bf16 %v562_v33, %v561_v35  ;;  %v2303_v35 = vld [vmem:[#allocation10 + $0x18] sm:$0xff]  }
 0x226   :  { %v2005_v7 = vpop.f32.mrf.mxu1 }
 0x227   :  { %v550_v9 = vadd.f32 %v2005_v7, %v1746_v3  ;;  %v565_v23 = vmax.f32 %v539_v8, 0.0 }
 0x228   :  { %v541_v10 = vpop.f32.mrf.mxu1 }
 0x229   :  { %v568_v13 = vmax.f32 %v550_v9, 0.0  ;;  %v542_v16 = vadd.f32 %v1746_v3, %v541_v10 }
 0x22b   :  { %v2669_v24 = vpack.c.bf16 %v568_v13, %v567_v12  ;;  %v566_v25 = vmax.f32 %v542_v16, 0.0 }
 0x22d   :  { %v2671_v28 = vpack.c.bf16 %v566_v25, %v565_v23  ;;  %2006 = vmatprep.subr.bf16.mxu0 %v2669_v24  ;;  %v2299_v25 = vld [vmem:[#allocation10 + $0x38] sm:$0xff]  }
 0x22e   :  { %2007 = vmatpush3.bf16.msra.mxu0 %v2669_v24  ;;  %2102 = vmatprep.subr.bf16.mxu1 %v2299_v25 }
 0x22f   :  { %2008 = vmatprep.subr.bf16.mxu0 %v2671_v28 }
 0x232   :  { %2009 = vmatpush3.bf16.msra.mxu0 %v2671_v28 }
 0x233   :  { %2010 = vmatprep.subr.bf16.mxu0 %v2676_v32 }
 0x236   :  { %2011 = vmatpush3.bf16.msra.mxu0 %v2676_v32 }
 0x237   :  { %2012 = vmatprep.subr.bf16.mxu0 %v2680_v38 }
 0x23a   :  { %2013 = vmatpush3.bf16.msra.mxu0 %v2680_v38 }
 0x23b   :  { %2014 = vmatprep.subr.bf16.mxu0 %v2684_v42 }
 0x23e   :  { %2015 = vmatpush3.bf16.msra.mxu0 %v2684_v42 }
 0x23f   :  { %2016 = vmatprep.subr.bf16.mxu0 %v2688_v48 }
 0x242   :  { %2017 = vmatpush3.bf16.msra.mxu0 %v2688_v48 }
 0x243   :  { %2018 = vmatprep.subr.bf16.mxu0 %v2692_v51 }
 0x246   :  { %2019 = vmatpush3.bf16.msra.mxu0 %v2692_v51 }
 0x247   :  { %2020 = vmatprep.subr.bf16.mxu0 %v2696_v54 }
 0x24a   :  { %2021 = vmatpush3.bf16.msra.mxu0 %v2696_v54 }
 0x24d   :  { %2023 = vmatmul.mubr.bf16.vlgmr.msra.gmra.mxu0 %v2644_v14 }
 0x24e   :  { %2026 = vmatprep.mubr.bf16.mxu0 %v2646_v15 }
 0x255   :  { %2027 = vmatmul.mubr.bf16.gmra.mxu0 %v2650_v17 }
 0x256   :  { %2030 = vmatprep.mubr.bf16.mxu0 %v2652_v18 }
 0x25d   :  { %2031 = vmatmul.mubr.bf16.gmra.mxu0 %v2656_v19 }
 0x25e   :  { %2034 = vmatprep.mubr.bf16.mxu0 %v2658_v20 }
 0x265   :  { %2035 = vmatmul.mubr.bf16.gmra.mxu0 %v2662_v21 }
 0x266   :  { %2086 = vmatprep.mubr.bf16.mxu0 %v2641_v4 }
 0x30d   :  { %v2024_v57 = vpop.f32.mrf.mxu0 }
 0x30f   :  { %v611_v58 = vpop.f32.mrf.mxu0 }
 0x311   :  { %v2025_v59 = vpop.f32.mrf.mxu0 }
 0x312   :  { %v675_v62 = vpack.c.bf16 %v2025_v59, %v2024_v57 }
 0x313   :  { %v614_v60 = vpop.f32.mrf.mxu0 }
 0x314   :  { %v674_v61 = vpack.c.bf16 %v614_v60, %v611_v58 }
 0x315   :  { %v2028_v63 = vpop.f32.mrf.mxu0 }
 0x316   :  { %2054 = vmatprep.mubr.bf16.mxu1 %v674_v61 }
 0x317   :  { %v627_v0 = vpop.f32.mrf.mxu0  ;;  %2055 = vmatmul.mubr.bf16.vlgmr.msra.gmra.mxu1 %v675_v62 }
 0x318   :  { %2103 = vmatpush3.bf16.msra.mxu1 %v2299_v25 }
 0x319   :  { %v2029_v1 = vpop.f32.mrf.mxu0  ;;  %2104 = vmatprep.subr.bf16.mxu1 %v2300_v26 }
 0x31a   :  { %v677_v4 = vpack.c.bf16 %v2029_v1, %v2028_v63 }
 0x31b   :  { %v630_v2 = vpop.f32.mrf.mxu0 }
 0x31c   :  { %v676_v3 = vpack.c.bf16 %v630_v2, %v627_v0  ;;  %2105 = vmatpush3.bf16.msra.mxu1 %v2300_v26 }
 0x31d   :  { %v2032_v5 = vpop.f32.mrf.mxu0  ;;  %2106 = vmatprep.subr.bf16.mxu1 %v2301_v27 }
 0x31e   :  { %2058 = vmatprep.mubr.bf16.mxu1 %v676_v3 }
 0x31f   :  { %v643_v6 = vpop.f32.mrf.mxu0  ;;  %2059 = vmatmul.mubr.bf16.gmra.mxu1 %v677_v4 }
 0x320   :  { %2107 = vmatpush3.bf16.msra.mxu1 %v2301_v27 }
 0x321   :  { %v2033_v7 = vpop.f32.mrf.mxu0  ;;  %2108 = vmatprep.subr.bf16.mxu1 %v2302_v31 }
 0x322   :  { %v679_v10 = vpack.c.bf16 %v2033_v7, %v2032_v5 }
 0x323   :  { %v646_v8 = vpop.f32.mrf.mxu0 }
 0x324   :  { %v678_v9 = vpack.c.bf16 %v646_v8, %v643_v6  ;;  %2109 = vmatpush3.bf16.msra.mxu1 %v2302_v31 }
 0x325   :  { %v2036_v11 = vpop.f32.mrf.mxu0  ;;  %2110 = vmatprep.subr.bf16.mxu1 %v2303_v35 }
 0x326   :  { %2062 = vmatprep.mubr.bf16.mxu1 %v678_v9 }
 0x327   :  { %v659_v12 = vpop.f32.mrf.mxu0  ;;  %2063 = vmatmul.mubr.bf16.gmra.mxu1 %v679_v10 }
 0x328   :  { %2111 = vmatpush3.bf16.msra.mxu1 %v2303_v35 }
 0x329   :  { %v2037_v13 = vpop.f32.mrf.mxu0  ;;  %2112 = vmatprep.subr.bf16.mxu1 %v2304_v39 }
 0x32a   :  { %v681_v23 = vpack.c.bf16 %v2037_v13, %v2036_v11 }
 0x32b   :  { %v662_v16 = vpop.f32.mrf.mxu0 }
 0x32c   :  { %v680_v22 = vpack.c.bf16 %v662_v16, %v659_v12  ;;  %2113 = vmatpush3.bf16.msra.mxu1 %v2304_v39 }
 0x32e   :  { %2066 = vmatprep.mubr.bf16.mxu1 %v680_v22 }
 0x32f   :  { %2067 = vmatmul.mubr.bf16.gmra.mxu1 %v681_v23 }
 0x3d7   :  { %v2709_v29 = vpop.f32.mrf.mxu1 }
 0x3d8   :  { %v796_v31 = vadd.f32 %v2709_v29, %v1755_v49  ;;  %v2291_v29 = vld [vmem:[#allocation13 + $0x38] sm:$0xff]  }
 0x3d9   :  { %v2711_v30 = vpop.f32.mrf.mxu1 }
 0x3db   :  { %v2057_v33 = vpop.f32.mrf.mxu1 }
 0x3dc   :  { %v799_v25 = vadd.f32 %v2057_v33, %v1755_v49 }
 0x3dd   :  { %v2713_v34 = vpop.f32.mrf.mxu1 }
 0x3de   :  { %v791_v39 = vadd.f32 %v1755_v49, %v2713_v34  ;;  %v2294_v34 = vld [vmem:[#allocation13 + $0x20] sm:$0xff]  }
 0x3df   :  { %v2060_v36 = vpop.f32.mrf.mxu1 }
 0x3e0   :  { %v812_v10 = vadd.f32 %v2060_v36, %v1755_v49  ;;  %v853_v36 = vmax.f32 %v799_v25, 0.0  ;;  %v2313_v25 = vld [vmem:[#allocation11 + $0x8] sm:$0xff]  }
 0x3e1   :  { %v803_v37 = vpop.f32.mrf.mxu1 }
 0x3e2   :  { %v856_v22 = vmax.f32 %v812_v10, 0.0  ;;  %v804_v23 = vadd.f32 %v1755_v49, %v803_v37  ;;  %v851_v37 = vmax.f32 %v791_v39, 0.0 }
 0x3e3   :  { %v2061_v40 = vpop.f32.mrf.mxu1 }
 0x3e4   :  { %v815_v7 = vadd.f32 %v2061_v40, %v1755_v49  ;;  %v854_v35 = vmax.f32 %v804_v23, 0.0 }
 0x3e5   :  { %v806_v41 = vpop.f32.mrf.mxu1 }
 0x3e6   :  { %v857_v12 = vmax.f32 %v815_v7, 0.0  ;;  %v807_v13 = vadd.f32 %v1755_v49, %v806_v41  ;;  %v852_v41 = vmax.f32 %v796_v31, 0.0 }
 0x3e7   :  { %v2064_v43 = vpop.f32.mrf.mxu1 }
 0x3e8   :  { %v828_v62 = vadd.f32 %v2064_v43, %v1755_v49  ;;  %v869_v26 = vpack.c.bf16 %v857_v12, %v856_v22  ;;  %v855_v27 = vmax.f32 %v807_v13, 0.0  ;;  %v788_v43 = vadd.f32 %v1755_v49, %v2711_v30  ;;  %v2293_v30 = vld [vmem:[#allocation13 + $0x28] sm:$0xff]  }
 0x3e9   :  { %v819_v44 = vpop.f32.mrf.mxu1 }
 0x3ea   :  { %v860_v5 = vmax.f32 %v828_v62, 0.0  ;;  %v820_v6 = vadd.f32 %v1755_v49, %v819_v44  ;;  %v868_v40 = vpack.c.bf16 %v855_v27, %v854_v35  ;;  %v867_v44 = vpack.c.bf16 %v853_v36, %v852_v41  ;;  %v2308_v62 = vld [vmem:[#allocation11 + $0x30] sm:$0xff]   ;;  %v2314_v35 = vld [vmem:[#allocation11] sm:$0xff]  }
 0x3eb   :  { %v2065_v45 = vpop.f32.mrf.mxu1  ;;  %v850_v33 = vmax.f32 %v788_v43, 0.0 }
 0x3ec   :  { %v831_v58 = vadd.f32 %v2065_v45, %v1755_v49  ;;  %v858_v11 = vmax.f32 %v820_v6, 0.0  ;;  %v2310_v6 = vld [vmem:[#allocation11 + $0x20] sm:$0xff]  }
 0x3ed   :  { %v822_v46 = vpop.f32.mrf.mxu1  ;;  %v866_v45 = vpack.c.bf16 %v851_v37, %v850_v33 }
 0x3ee   :  { %v861_v2 = vmax.f32 %v831_v58, 0.0  ;;  %v823_v3 = vadd.f32 %v1755_v49, %v822_v46  ;;  %v2292_v46 = vld [vmem:[#allocation13 + $0x30] sm:$0xff]  }
 0x3ef   :  { %v2068_v47 = vpop.f32.mrf.mxu1 }
 0x3f0   :  { %v844_v52 = vadd.f32 %v2068_v47, %v1755_v49  ;;  %v2725_v8 = vpack.c.bf16 %v861_v2, %v860_v5  ;;  %v859_v9 = vmax.f32 %v823_v3, 0.0  ;;  %v2295_v47 = vld [vmem:[#allocation13 + $0x18] sm:$0xff]  }
 0x3f1   :  { %v835_v50 = vpop.f32.mrf.mxu1 }
 0x3f2   :  { %v836_v55 = vadd.f32 %v1755_v49, %v835_v50  ;;  %v864_v59 = vmax.f32 %v844_v52, 0.0  ;;  %v870_v16 = vpack.c.bf16 %v859_v9, %v858_v11  ;;  %v2750_v50 = vld [vmem:[#allocation14 + $0x28] sm:$0xff]   ;;  %v2754_v52 = vld [vmem:[#allocation14 + $0x20] sm:$0xff]   ;;  %v2311_v9 = vld [vmem:[#allocation11 + $0x18] sm:$0xff]  }
 0x3f3   :  { %v2069_v53 = vpop.f32.mrf.mxu1 }
 0x3f4   :  { %v847_v56 = vadd.f32 %v2069_v53, %v1755_v49  ;;  %v862_v63 = vmax.f32 %v836_v55, 0.0  ;;  %v2758_v53 = vld [vmem:[#allocation14 + $0x18] sm:$0xff]  }
 0x3f5   :  { %v838_v57 = vpop.f32.mrf.mxu1 }
 0x3f6   :  { %v865_v60 = vmax.f32 %v847_v56, 0.0  ;;  %v839_v61 = vadd.f32 %v1755_v49, %v838_v57  ;;  %v2296_v49 = vld [vmem:[#allocation13 + $0x10] sm:$0xff]  }
 0x3f8   :  { %v2718_v0 = vpack.c.bf16 %v865_v60, %v864_v59  ;;  %v863_v1 = vmax.f32 %v839_v61, 0.0 }
 0x3fa   :  { %v2720_v4 = vpack.c.bf16 %v863_v1, %v862_v63  ;;  %2070 = vmatprep.subr.bf16.mxu0 %v2718_v0  ;;  %v2309_v1 = vld [vmem:[#allocation11 + $0x28] sm:$0xff]  }
 0x3fb   :  { %2071 = vmatpush3.bf16.msra.mxu0 %v2718_v0 }
 0x3fc   :  { %2072 = vmatprep.subr.bf16.mxu0 %v2720_v4 }
 0x3ff   :  { %2073 = vmatpush3.bf16.msra.mxu0 %v2720_v4 }
 0x400   :  { %2074 = vmatprep.subr.bf16.mxu0 %v2725_v8 }
 0x403   :  { %2075 = vmatpush3.bf16.msra.mxu0 %v2725_v8 }
 0x404   :  { %2076 = vmatprep.subr.bf16.mxu0 %v870_v16 }
 0x407   :  { %2077 = vmatpush3.bf16.msra.mxu0 %v870_v16 }
 0x408   :  { %2078 = vmatprep.subr.bf16.mxu0 %v869_v26 }
 0x40b   :  { %2079 = vmatpush3.bf16.msra.mxu0 %v869_v26 }
 0x40c   :  { %2080 = vmatprep.subr.bf16.mxu0 %v868_v40 }
 0x40f   :  { %2081 = vmatpush3.bf16.msra.mxu0 %v868_v40 }
 0x410   :  { %2082 = vmatprep.subr.bf16.mxu0 %v867_v44 }
 0x413   :  { %2083 = vmatpush3.bf16.msra.mxu0 %v867_v44 }
 0x414   :  { %2084 = vmatprep.subr.bf16.mxu0 %v866_v45 }
 0x417   :  { %2085 = vmatpush3.bf16.msra.mxu0 %v866_v45 }
 0x418   :  { %2134 = vmatprep.subr.bf16.mxu0 %v2291_v29 }
 0x41a   :  { %2087 = vmatmul.mubr.bf16.vlgmr.msra.gmra.mxu0 %v2644_v14  ;;  %v2297_v14 = vld [vmem:[#allocation13 + $0x8] sm:$0xff]  }
 0x41b   :  { %2135 = vmatpush3.bf16.msra.mxu0 %v2291_v29  ;;  %2090 = vmatprep.mubr.bf16.mxu0 %v2646_v15  ;;  %v2298_v15 = vld [vmem:[#allocation13] sm:$0xff]  }
 0x41c   :  { %2136 = vmatprep.subr.bf16.mxu0 %v2292_v46 }
 0x41f   :  { %2137 = vmatpush3.bf16.msra.mxu0 %v2292_v46 }
 0x420   :  { %2138 = vmatprep.subr.bf16.mxu0 %v2293_v30 }
 0x422   :  { %2091 = vmatmul.mubr.bf16.gmra.mxu0 %v2650_v17  ;;  %v2305_v17 = vld [vmem:[#allocation10 + $0x8] sm:$0xff]  }
 0x423   :  { %2139 = vmatpush3.bf16.msra.mxu0 %v2293_v30  ;;  %2094 = vmatprep.mubr.bf16.mxu0 %v2652_v18  ;;  %v2306_v18 = vld [vmem:[#allocation10] sm:$0xff]  }
 0x424   :  { %2140 = vmatprep.subr.bf16.mxu0 %v2294_v34  ;;  %2114 = vmatprep.subr.bf16.mxu1 %v2305_v17 }
 0x425   :  { %2115 = vmatpush3.bf16.msra.mxu1 %v2305_v17 }
 0x426   :  { %2116 = vmatprep.subr.bf16.mxu1 %v2306_v18 }
 0x427   :  { %2141 = vmatpush3.bf16.msra.mxu0 %v2294_v34 }
 0x428   :  { %2142 = vmatprep.subr.bf16.mxu0 %v2295_v47 }
 0x429   :  { %2117 = vmatpush3.bf16.msra.mxu1 %v2306_v18 }
 0x42a   :  { %2095 = vmatmul.mubr.bf16.gmra.mxu0 %v2656_v19  ;;  %v2307_v19 = vld [vmem:[#allocation11 + $0x38] sm:$0xff]  }
 0x42b   :  { %2143 = vmatpush3.bf16.msra.mxu0 %v2295_v47  ;;  %2098 = vmatprep.mubr.bf16.mxu0 %v2658_v20  ;;  %v2743_v20 = vld [vmem:[#allocation14 + $0x38] sm:$0xff]  }
 0x42c   :  { %2144 = vmatprep.subr.bf16.mxu0 %v2296_v49  ;;  %2166 = vmatprep.subr.bf16.mxu1 %v2307_v19 }
 0x42f   :  { %2145 = vmatpush3.bf16.msra.mxu0 %v2296_v49 }
 0x430   :  { %2146 = vmatprep.subr.bf16.mxu0 %v2297_v14 }
 0x432   :  { %2099 = vmatmul.mubr.bf16.gmra.mxu0 %v2662_v21  ;;  %v2745_v21 = vld [vmem:[#allocation14 + $0x30] sm:$0xff]  }
 0x433   :  { %2147 = vmatpush3.bf16.msra.mxu0 %v2297_v14  ;;  %2150 = vmatprep.mubr.bf16.mxu0 %v866_v45 }
 0x434   :  { %2148 = vmatprep.subr.bf16.mxu0 %v2298_v15 }
 0x437   :  { %2149 = vmatpush3.bf16.msra.mxu0 %v2298_v15 }
 0x438   :  { %2198 = vmatprep.subr.bf16.mxu0 %v2743_v20 }
 0x43a   :  { %2151 = vmatmul.mubr.bf16.vlgmr.msra.gmra.mxu0 %v867_v44 }
 0x43b   :  { %2154 = vmatprep.mubr.bf16.mxu0 %v868_v40  ;;  %2199 = vmatpush3.bf16.msra.mxu0 %v2743_v20 }
 0x43c   :  { %2200 = vmatprep.subr.bf16.mxu0 %v2745_v21 }
 0x43f   :  { %2201 = vmatpush3.bf16.msra.mxu0 %v2745_v21 }
 0x440   :  { %2202 = vmatprep.subr.bf16.mxu0 %v2750_v50 }
 0x442   :  { %2155 = vmatmul.mubr.bf16.gmra.mxu0 %v869_v26 }
 0x443   :  { %2158 = vmatprep.mubr.bf16.mxu0 %v870_v16  ;;  %2203 = vmatpush3.bf16.msra.mxu0 %v2750_v50  ;;  %v2312_v16 = vld [vmem:[#allocation11 + $0x10] sm:$0xff]  }
 0x444   :  { %2204 = vmatprep.subr.bf16.mxu0 %v2754_v52 }
 0x447   :  { %2205 = vmatpush3.bf16.msra.mxu0 %v2754_v52 }
 0x448   :  { %2206 = vmatprep.subr.bf16.mxu0 %v2758_v53 }
 0x44a   :  { %2159 = vmatmul.mubr.bf16.gmra.mxu0 %v2725_v8 }
 0x44b   :  { %2162 = vmatprep.mubr.bf16.mxu0 %v2720_v4  ;;  %2207 = vmatpush3.bf16.msra.mxu0 %v2758_v53 }
 0x452   :  { %2163 = vmatmul.mubr.bf16.gmra.mxu0 %v2718_v0 }
 0x4da   :  { %v2088_v55 = vpop.f32.mrf.mxu0 }
 0x4dc   :  { %v908_v56 = vpop.f32.mrf.mxu0 }
 0x4de   :  { %v2089_v57 = vpop.f32.mrf.mxu0 }
 0x4df   :  { %v972_v60 = vpack.c.bf16 %v2089_v57, %v2088_v55 }
 0x4e0   :  { %v911_v58 = vpop.f32.mrf.mxu0 }
 0x4e1   :  { %v971_v59 = vpack.c.bf16 %v911_v58, %v908_v56 }
 0x4e2   :  { %v2092_v61 = vpop.f32.mrf.mxu0 }
 0x4e3   :  { %2118 = vmatprep.mubr.bf16.mxu1 %v971_v59 }
 0x4e4   :  { %v924_v63 = vpop.f32.mrf.mxu0  ;;  %2119 = vmatmul.mubr.bf16.vlgmr.msra.gmra.mxu1 %v972_v60 }
 0x4e5   :  { %2167 = vmatpush3.bf16.msra.mxu1 %v2307_v19 }
 0x4e6   :  { %v2093_v0 = vpop.f32.mrf.mxu0  ;;  %2168 = vmatprep.subr.bf16.mxu1 %v2308_v62 }
 0x4e7   :  { %v974_v4 = vpack.c.bf16 %v2093_v0, %v2092_v61 }
 0x4e8   :  { %v927_v2 = vpop.f32.mrf.mxu0 }
 0x4e9   :  { %v973_v3 = vpack.c.bf16 %v927_v2, %v924_v63  ;;  %2169 = vmatpush3.bf16.msra.mxu1 %v2308_v62 }
 0x4ea   :  { %v2096_v5 = vpop.f32.mrf.mxu0  ;;  %2170 = vmatprep.subr.bf16.mxu1 %v2309_v1 }
 0x4eb   :  { %2122 = vmatprep.mubr.bf16.mxu1 %v973_v3 }
 0x4ec   :  { %v940_v7 = vpop.f32.mrf.mxu0  ;;  %2123 = vmatmul.mubr.bf16.gmra.mxu1 %v974_v4 }
 0x4ed   :  { %2171 = vmatpush3.bf16.msra.mxu1 %v2309_v1 }
 0x4ee   :  { %v2097_v8 = vpop.f32.mrf.mxu0  ;;  %2172 = vmatprep.subr.bf16.mxu1 %v2310_v6 }
 0x4ef   :  { %v976_v12 = vpack.c.bf16 %v2097_v8, %v2096_v5 }
 0x4f0   :  { %v943_v10 = vpop.f32.mrf.mxu0 }
 0x4f1   :  { %v975_v11 = vpack.c.bf16 %v943_v10, %v940_v7  ;;  %2173 = vmatpush3.bf16.msra.mxu1 %v2310_v6 }
 0x4f2   :  { %v2100_v13 = vpop.f32.mrf.mxu0  ;;  %2174 = vmatprep.subr.bf16.mxu1 %v2311_v9 }
 0x4f3   :  { %2126 = vmatprep.mubr.bf16.mxu1 %v975_v11 }
 0x4f4   :  { %v956_v22 = vpop.f32.mrf.mxu0  ;;  %2127 = vmatmul.mubr.bf16.gmra.mxu1 %v976_v12 }
 0x4f5   :  { %2175 = vmatpush3.bf16.msra.mxu1 %v2311_v9 }
 0x4f6   :  { %v2101_v23 = vpop.f32.mrf.mxu0  ;;  %2176 = vmatprep.subr.bf16.mxu1 %v2312_v16 }
 0x4f7   :  { %v978_v31 = vpack.c.bf16 %v2101_v23, %v2100_v13 }
 0x4f8   :  { %v959_v26 = vpop.f32.mrf.mxu0 }
 0x4f9   :  { %v977_v27 = vpack.c.bf16 %v959_v26, %v956_v22  ;;  %2177 = vmatpush3.bf16.msra.mxu1 %v2312_v16 }
 0x4fa   :  { %2178 = vmatprep.subr.bf16.mxu1 %v2313_v25  ;;  %v2152_v26 = vpop.f32.mrf.mxu0 }
 0x4fb   :  { %2130 = vmatprep.mubr.bf16.mxu1 %v977_v27 }
 0x4fc   :  { %2131 = vmatmul.mubr.bf16.gmra.mxu1 %v978_v31  ;;  %v1285_v27 = vpop.f32.mrf.mxu0 }
 0x4fd   :  { %2179 = vmatpush3.bf16.msra.mxu1 %v2313_v25  ;;  %2182 = vmatprep.mubr.bf16.mxu1 %v2696_v54 }
 0x4fe   :  { %2180 = vmatprep.subr.bf16.mxu1 %v2314_v35  ;;  %v2153_v31 = vpop.f32.mrf.mxu0 }
 0x501   :  { %2181 = vmatpush3.bf16.msra.mxu1 %v2314_v35  ;;  %v1288_v35 = vpop.f32.mrf.mxu0 }
 0x502   :  { %2230 = vmatprep.subr.bf16.mxu1 %v2743_v20 }
 0x504   :  { %2183 = vmatmul.mubr.bf16.vlgmr.msra.gmra.mxu1 %v2692_v51 }
 0x505   :  { %2186 = vmatprep.mubr.bf16.mxu1 %v2688_v48  ;;  %2238 = vmatpush3.bf16.msra.mxu1 %v2743_v20  ;;  %v2320_v48 = vld [vmem:[#allocation14 + $0x10] sm:$0xff]  }
 0x506   :  { %2231 = vmatprep.subr.bf16.mxu1 %v2745_v21  ;;  %2208 = vmatprep.subr.bf16.mxu0 %v2320_v48 }
 0x507   :  { %2209 = vmatpush3.bf16.msra.mxu0 %v2320_v48 }
 0x509   :  { %2239 = vmatpush3.bf16.msra.mxu1 %v2745_v21 }
 0x50a   :  { %2232 = vmatprep.subr.bf16.mxu1 %v2750_v50 }
 0x50c   :  { %2187 = vmatmul.mubr.bf16.gmra.mxu1 %v2684_v42  ;;  %v2322_v42 = vld [vmem:[#allocation14] sm:$0xff]  }
 0x50d   :  { %2190 = vmatprep.mubr.bf16.mxu1 %v2680_v38  ;;  %2240 = vmatpush3.bf16.msra.mxu1 %v2750_v50  ;;  %v2321_v38 = vld [vmem:[#allocation14 + $0x8] sm:$0xff]  }
 0x50e   :  { %2233 = vmatprep.subr.bf16.mxu1 %v2754_v52  ;;  %2210 = vmatprep.subr.bf16.mxu0 %v2321_v38 }
 0x50f   :  { %2211 = vmatpush3.bf16.msra.mxu0 %v2321_v38 }
 0x510   :  { %2212 = vmatprep.subr.bf16.mxu0 %v2322_v42 }
 0x511   :  { %2241 = vmatpush3.bf16.msra.mxu1 %v2754_v52 }
 0x512   :  { %2234 = vmatprep.subr.bf16.mxu1 %v2758_v53 }
 0x513   :  { %2213 = vmatpush3.bf16.msra.mxu0 %v2322_v42 }
 0x514   :  { %2191 = vmatmul.mubr.bf16.gmra.mxu1 %v2676_v32 }
 0x515   :  { %2194 = vmatprep.mubr.bf16.mxu1 %v2671_v28  ;;  %2242 = vmatpush3.bf16.msra.mxu1 %v2758_v53 }
 0x516   :  { %2235 = vmatprep.subr.bf16.mxu1 %v2320_v48 }
 0x519   :  { %2243 = vmatpush3.bf16.msra.mxu1 %v2320_v48  ;;  %v2156_v48 = vpop.f32.mrf.mxu0 }
 0x51a   :  { %2236 = vmatprep.subr.bf16.mxu1 %v2321_v38 }
 0x51c   :  { %2195 = vmatmul.mubr.bf16.gmra.mxu1 %v2669_v24  ;;  %v1764_v24 = vld [vmem:[%s2830_s7] ss:$0 sm:$0xff] }
 0x51d   :  { %2244 = vmatpush3.bf16.msra.mxu1 %v2321_v38 }
 0x51e   :  { %2237 = vmatprep.subr.bf16.mxu1 %v2322_v42 }
 0x521   :  { %2245 = vmatpush3.bf16.msra.mxu1 %v2322_v42  ;;  %v1301_v42 = vpop.f32.mrf.mxu0 }
 0x5a4   :  { %v2120_v28 = vpop.f32.mrf.mxu1 }
 0x5a5   :  { %v1093_v39 = vadd.f32 %v2120_v28, %v1764_v24 }
 0x5a6   :  { %v1084_v32 = vpop.f32.mrf.mxu1 }
 0x5a7   :  { %v1085_v54 = vadd.f32 %v1764_v24, %v1084_v32  ;;  %v1149_v45 = vmax.f32 %v1093_v39, 0.0  ;;  %v2157_v32 = vpop.f32.mrf.mxu0 }
 0x5a8   :  { %v2121_v51 = vpop.f32.mrf.mxu1 }
 0x5a9   :  { %v1096_v36 = vadd.f32 %v2121_v51, %v1764_v24  ;;  %v1147_v37 = vmax.f32 %v1085_v54, 0.0  ;;  %v1304_v54 = vpop.f32.mrf.mxu0 }
 0x5aa   :  { %v1087_v40 = vpop.f32.mrf.mxu1 }
 0x5ab   :  { %v1088_v41 = vadd.f32 %v1764_v24, %v1087_v40  ;;  %v1150_v43 = vmax.f32 %v1096_v36, 0.0  ;;  %v2160_v36 = vpop.f32.mrf.mxu0 }
 0x5ac   :  { %v2124_v44 = vpop.f32.mrf.mxu1 }
 0x5ad   :  { %v1148_v33 = vmax.f32 %v1088_v41, 0.0  ;;  %v1164_v30 = vpack.c.bf16 %v1150_v43, %v1149_v45  ;;  %v1109_v14 = vadd.f32 %v2124_v44, %v1764_v24  ;;  %v1317_v40 = vpop.f32.mrf.mxu0 }
 0x5ae   :  { %v1100_v29 = vpop.f32.mrf.mxu1 }
 0x5af   :  { %v1163_v46 = vpack.c.bf16 %v1148_v33, %v1147_v37  ;;  %v1101_v47 = vadd.f32 %v1764_v24, %v1100_v29  ;;  %v1153_v50 = vmax.f32 %v1109_v14, 0.0  ;;  %v2161_v43 = vpop.f32.mrf.mxu0 }
 0x5b0   :  { %v2125_v34 = vpop.f32.mrf.mxu1 }
 0x5b1   :  { %v1112_v49 = vadd.f32 %v2125_v34, %v1764_v24  ;;  %2214 = vmatprep.mubr.bf16.mxu0 %v1163_v46  ;;  %v1151_v20 = vmax.f32 %v1101_v47, 0.0  ;;  %v2784_v37 = vpop.f32.mrf.mxu0 }
 0x5b2   :  { %v1103_v15 = vpop.f32.mrf.mxu1  ;;  %2215 = vmatmul.mubr.bf16.vlgmr.msra.gmra.mxu0 %v1164_v30 }
 0x5b3   :  { %v1104_v17 = vadd.f32 %v1764_v24, %v1103_v15  ;;  %v1154_v18 = vmax.f32 %v1112_v49, 0.0  ;;  %v2786_v45 = vpop.f32.mrf.mxu0 }
 0x5b4   :  { %v2128_v19 = vpop.f32.mrf.mxu1 }
 0x5b5   :  { %v1152_v21 = vmax.f32 %v1104_v17, 0.0  ;;  %v1166_v55 = vpack.c.bf16 %v1154_v18, %v1153_v50  ;;  %v1125_v59 = vadd.f32 %v2128_v19, %v1764_v24  ;;  %v2788_v46 = vpop.f32.mrf.mxu0  ;;  %v2797_v18 = vld [vmem:[%s2834_s11] ss:$0 sm:$0xff]  ;;  %s2525_s11 = smov [#allocation16]  }
 0x5b6   :  { %v1116_v52 = vpop.f32.mrf.mxu1  ;;  %s1714_s22 = sshll.u32 %s2525_s11, 4  ;;  %s1715_s22 = int_to_ptr.vmem [resolvable:$true] %s1714_s22 }
 0x5b7   :  { %v1165_v53 = vpack.c.bf16 %v1152_v21, %v1151_v20  ;;  %v1117_v57 = vadd.f32 %v1764_v24, %v1116_v52  ;;  %v1157_v2 = vmax.f32 %v1125_v59, 0.0  ;;  %v2790_v34 = vpop.f32.mrf.mxu0  ;;  %s2483_s23 = scalar_lea.vmem %s1715_s22, 2048  ;;  %p2488_p13 = scmp.lt.s32.totalorder %s1715_s22, %s1715_s22 }
 0x5b8   :  { %v2129_v56 = vpop.f32.mrf.mxu1  ;;  %p2484_p12 = scmp.ne.s32.totalorder %s1715_s22, %s2483_s23  ;;  %p2489_p0 = scmp.lt.s32.totalorder %s2483_s23, %s2483_s23 }
 0x5b9   :  { %v1128_v58 = vadd.f32 %v2129_v56, %v1764_v24  ;;  %2218 = vmatprep.mubr.bf16.mxu0 %v1165_v53  ;;  %v1155_v0 = vmax.f32 %v1117_v57, 0.0  ;;  %v2792_v49 = vpop.f32.mrf.mxu0 }
 0x5ba   :  { %v1119_v60 = vpop.f32.mrf.mxu1  ;;  %2219 = vmatmul.mubr.bf16.gmra.mxu0 %v1166_v55  ;;  %p2490_p1 = por %p2489_p0, %p2488_p13 }
 0x5bb   :  { %v1120_v61 = vadd.f32 %v1764_v24, %v1119_v60  ;;  %v1158_v62 = vmax.f32 %v1128_v58, 0.0 }
 0x5bc   :  { %v2132_v63 = vpop.f32.mrf.mxu1  ;;  %p2491_p2 = pnand %p2490_p1, %p2484_p12 }
 0x5bd   :  { %v1156_v1 = vmax.f32 %v1120_v61, 0.0  ;;  %v1168_v5 = vpack.c.bf16 %v1158_v62, %v1157_v2  ;;  %v1141_v9 = vadd.f32 %v2132_v63, %v1764_v24 }
 0x5be   :  { %v1132_v3 = vpop.f32.mrf.mxu1 }
 0x5bf   :  { %v1167_v4 = vpack.c.bf16 %v1156_v1, %v1155_v0  ;;  %v1133_v7 = vadd.f32 %v1764_v24, %v1132_v3  ;;  %v1161_v22 = vmax.f32 %v1141_v9, 0.0 }
 0x5c0   :  { %v2133_v6 = vpop.f32.mrf.mxu1 }
 0x5c1   :  { %v1144_v8 = vadd.f32 %v2133_v6, %v1764_v24  ;;  %2222 = vmatprep.mubr.bf16.mxu1 %v1167_v4  ;;  %v1159_v13 = vmax.f32 %v1133_v7, 0.0 }
 0x5c2   :  { %v1135_v10 = vpop.f32.mrf.mxu1  ;;  %2223 = vmatmul.mubr.bf16.vlgmr.msra.gmra.mxu1 %v1168_v5 }
 0x5c3   :  { %v1136_v11 = vadd.f32 %v1764_v24, %v1135_v10  ;;  %v1162_v12 = vmax.f32 %v1144_v8, 0.0 }
 0x5c4   :  { %v2184_v38 = vpop.f32.mrf.mxu1 }
 0x5c5   :  { %v1160_v16 = vmax.f32 %v1136_v11, 0.0  ;;  %v1170_v25 = vpack.c.bf16 %v1162_v12, %v1161_v22  ;;  %v1439_v15 = vadd.f32 %v2184_v38, %v2152_v26 }
 0x5c6   :  { %v1430_v28 = vpop.f32.mrf.mxu1 }
 0x5c7   :  { %v1169_v23 = vpack.c.bf16 %v1160_v16, %v1159_v13  ;;  %v1431_v19 = vadd.f32 %v1430_v28, %v1285_v27 }
 0x5c8   :  { %v2185_v51 = vpop.f32.mrf.mxu1 }
 0x5c9   :  { %2226 = vmatprep.mubr.bf16.mxu1 %v1169_v23  ;;  %v1442_v52 = vadd.f32 %v2185_v51, %v2153_v31 }
 0x5ca   :  { %2227 = vmatmul.mubr.bf16.gmra.mxu1 %v1170_v25  ;;  %v1433_v24 = vpop.f32.mrf.mxu1 }
 0x5cb   :  { %v1434_v57 = vadd.f32 %v1433_v24, %v1288_v35 }
 0x5cc   :  { %v2188_v39 = vpop.f32.mrf.mxu1 }
 0x5cd   :  { %v1455_v62 = vadd.f32 %v2188_v39, %v2156_v48 }
 0x5ce   :  { %v1446_v41 = vpop.f32.mrf.mxu1 }
 0x5cf   :  { %v1447_v2 = vadd.f32 %v1446_v41, %v1301_v42 }
 0x5d0   :  { %v2189_v44 = vpop.f32.mrf.mxu1 }
 0x5d1   :  { %v1458_v7 = vadd.f32 %v2189_v44, %v2157_v32 }
 0x5d2   :  { %v1449_v33 = vpop.f32.mrf.mxu1 }
 0x5d3   :  { %v1450_v11 = vadd.f32 %v1449_v33, %v1304_v54 }
 0x5d4   :  { %v2192_v29 = vpop.f32.mrf.mxu1 }
 0x5d5   :  { %v1471_v23 = vadd.f32 %v2192_v29, %v2160_v36 }
 0x5d6   :  { %v1462_v30 = vpop.f32.mrf.mxu1 }
 0x5d7   :  { %v1463_v31 = vadd.f32 %v1462_v30, %v1317_v40 }
 0x5d8   :  { %v2193_v47 = vpop.f32.mrf.mxu1 }
 0x5d9   :  { %v1474_v42 = vadd.f32 %v2193_v47, %v2161_v43 }
 0x5da   :  { %v1465_v14 = vpop.f32.mrf.mxu1 }
 0x5db   :  { %v1466_v54 = vadd.f32 %v1465_v14, %v2784_v37 }
 0x5dc   :  { %v2196_v21 = vpop.f32.mrf.mxu1 }
 0x5dd   :  { %v1487_v40 = vadd.f32 %v2196_v21, %v2786_v45 }
 0x5de   :  { %v1478_v60 = vpop.f32.mrf.mxu1 }
 0x5df   :  { %v1479_v43 = vadd.f32 %v1478_v60, %v2788_v46 }
 0x5e0   :  { %v2197_v5 = vpop.f32.mrf.mxu1 }
 0x5e1   :  { %v1490_v37 = vadd.f32 %v2197_v5, %v2790_v34 }
 0x5e2   :  { %v1481_v16 = vpop.f32.mrf.mxu1 }
 0x5e3   :  { %v1482_v45 = vadd.f32 %v1481_v16, %v2792_v49 }
 0x672   :  { %v2216_v17 = vpop.f32.mrf.mxu0 }
 0x673   :  { %v1656_v20 = vadd.f32 %v2216_v17, %v1439_v15 }
 0x674   :  { %v1591_v50 = vpop.f32.mrf.mxu0 }
 0x675   :  { %v1679_v53 = vadd.f32 %v2797_v18, %v1656_v20  ;;  %v1654_v55 = vadd.f32 %v1591_v50, %v1431_v19 }
 0x676   :  { %v2217_v56 = vpop.f32.mrf.mxu0 }
 0x677   :  { %1695 = vst [vmem:[#allocation16 + $0x10] sm:$0xff] %v1679_v53  ;;  %v1677_v58 = vadd.f32 %v2797_v18, %v1654_v55  ;;  %v1657_v59 = vadd.f32 %v2217_v56, %v1442_v52 }
 0x678   :  { %v1594_v61 = vpop.f32.mrf.mxu0 }
 0x679   :  { %1693 = vst [vmem:[#allocation16] sm:$0xff] %v1677_v58  ;;  %v1680_v63 = vadd.f32 %v2797_v18, %v1657_v59  ;;  %v1655_v0 = vadd.f32 %v1594_v61, %v1434_v57 }
 0x67a   :  { %v2220_v1 = vpop.f32.mrf.mxu0 }
 0x67b   :  { %1696 = vst [vmem:[#allocation16 + $0x18] sm:$0xff] %v1680_v63  ;;  %v1678_v3 = vadd.f32 %v2797_v18, %v1655_v0  ;;  %v1660_v4 = vadd.f32 %v2220_v1, %v1455_v62 }
 0x67c   :  { %v1607_v6 = vpop.f32.mrf.mxu0 }
 0x67d   :  { %1694 = vst [vmem:[#allocation16 + $0x8] sm:$0xff] %v1678_v3  ;;  %v1683_v8 = vadd.f32 %v2797_v18, %v1660_v4  ;;  %v1658_v9 = vadd.f32 %v1607_v6, %v1447_v2 }
 0x67e   :  { %v2221_v10 = vpop.f32.mrf.mxu0 }
 0x67f   :  { %1699 = vst [vmem:[#allocation16 + $0x30] sm:$0xff] %v1683_v8  ;;  %v1681_v12 = vadd.f32 %v2797_v18, %v1658_v9  ;;  %v1661_v13 = vadd.f32 %v2221_v10, %v1458_v7 }
 0x680   :  { %v1610_v22 = vpop.f32.mrf.mxu0 }
 0x681   :  { %1697 = vst [vmem:[#allocation16 + $0x20] sm:$0xff] %v1681_v12  ;;  %v1684_v25 = vadd.f32 %v2797_v18, %v1661_v13  ;;  %v1659_v26 = vadd.f32 %v1610_v22, %v1450_v11 }
 0x682   :  { %v2224_v27 = vpop.f32.mrf.mxu1 }
 0x683   :  { %1700 = vst [vmem:[#allocation16 + $0x38] sm:$0xff] %v1684_v25  ;;  %v1682_v35 = vadd.f32 %v2797_v18, %v1659_v26  ;;  %v1664_v48 = vadd.f32 %v2224_v27, %v1471_v23 }
 0x684   :  { %v1623_v38 = vpop.f32.mrf.mxu1 }
 0x685   :  { %1698 = vst [vmem:[#allocation16 + $0x28] sm:$0xff] %v1682_v35  ;;  %v1687_v28 = vadd.f32 %v2797_v18, %v1664_v48  ;;  %v1662_v32 = vadd.f32 %v1623_v38, %v1463_v31 }
 0x686   :  { %v2225_v51 = vpop.f32.mrf.mxu1 }
 0x687   :  { %1703 = vst [vmem:[#allocation16 + $0x50] sm:$0xff] %v1687_v28  ;;  %v1685_v24 = vadd.f32 %v2797_v18, %v1662_v32  ;;  %v1665_v36 = vadd.f32 %v2225_v51, %v1474_v42 }
 0x688   :  { %v1626_v39 = vpop.f32.mrf.mxu1 }
 0x689   :  { %1701 = vst [vmem:[#allocation16 + $0x40] sm:$0xff] %v1685_v24  ;;  %v1688_v41 = vadd.f32 %v2797_v18, %v1665_v36  ;;  %v1663_v44 = vadd.f32 %v1626_v39, %v1466_v54 }
 0x68a   :  { %v2228_v33 = vpop.f32.mrf.mxu1 }
 0x68b   :  { %1704 = vst [vmem:[#allocation16 + $0x58] sm:$0xff] %v1688_v41  ;;  %v1686_v29 = vadd.f32 %v2797_v18, %v1663_v44  ;;  %v1668_v30 = vadd.f32 %v2228_v33, %v1487_v40 }
 0x68c   :  { %v1639_v47 = vpop.f32.mrf.mxu1 }
 0x68d   :  { %1702 = vst [vmem:[#allocation16 + $0x48] sm:$0xff] %v1686_v29  ;;  %v1691_v14 = vadd.f32 %v2797_v18, %v1668_v30  ;;  %v1666_v15 = vadd.f32 %v1639_v47, %v1479_v43 }
 0x68e   :  { %v2229_v17 = vpop.f32.mrf.mxu1 }
 0x68f   :  { %1707 = vst [vmem:[#allocation16 + $0x70] sm:$0xff] %v1691_v14  ;;  %v1689_v19 = vadd.f32 %v2797_v18, %v1666_v15  ;;  %v1669_v20 = vadd.f32 %v2229_v17, %v1490_v37 }
 0x690   :  { %v1642_v46 = vpop.f32.mrf.mxu1 }
 0x691   :  { %1705 = vst [vmem:[#allocation16 + $0x60] sm:$0xff] %v1689_v19  ;;  %v1692_v21 = vadd.f32 %v2797_v18, %v1669_v20  ;;  %v1667_v50 = vadd.f32 %v1642_v46, %v1482_v45 }
 0x693   :  { %1708 = vst [vmem:[#allocation16 + $0x78] sm:$0xff] %v1692_v21  ;;  %v1690_v34 = vadd.f32 %v2797_v18, %v1667_v50 }
 0x695   :  { %1706 = vst [vmem:[#allocation16 + $0x68] sm:$0xff] %v1690_v34 }
 0x696   :  { %2494 = shalt.err (!%p2491_p2)
}
 0x697   :  { %s2526_s24 = smov 128   ;;  %s2527_s25 = smov 8  }
 0x698   :  { %1720 = dma.vmem_to_hbm [thread:$0]  %s1715_s22, 2048, %s2835_s12, [#allocation4], %s2526_s24, %s2526_s24, %s2527_s25  }
 0x699   :  { %2513 = dma.done.wait [#allocation4], 2048  }
 0x69a   :  { %2514 = vsyncadd [#allocation4], 4294965248 }
 0x69b   :  { %1724 = vsyncpa [#allocation3], 1 }
 0x69c   :  { %1725 = vsyncpa [#allocation6], 1 }
 0x69d   :  { %1726 = vsyncpa [#allocation9], 1 }
 0x69e   :  { %1727 = vsyncpa [#allocation12], 1 }
 0x69f   :  { %1728 = vsyncpa [#allocation15], 1 }
 0x6a0   :  { %1729 = vsyncpa [#allocation4], 1 }

</bundles_post_ra>
